<compile_context>
chip_gen: v7x
topology: tpu7x:2x2x1
jax: 0.10.0
libtpu: 0.0.40
codegen_flags: <defaults>
</compile_context>

<pallas_src>
import math
from functools import partial

import numpy as np
import jax
import jax.numpy as jnp
from jax import lax
from jax.experimental import pallas as pl
from jax.experimental.pallas import tpu as pltpu

N_TASK_TYPES = 20
N_PRIORITIES = 10


def _choose_row_tile(n_rows: int, cap: int = 1024) -> int:
    """Row tile: multiple of 8, <= cap, aiming for >= 2 grid steps (dual-TC)."""
    if n_rows <= 8:
        return 8
    half = (n_rows + 1) // 2
    tile = ((half + 7) // 8) * 8
    return min(cap, tile)


def make_kernel(n_task_types: int, n_priorities: int):
    n_oh = n_task_types + n_priorities

    def kernel(packed_ref, w_oh_ref, w_val_ref, w2_ref, b2_ref, out_ref):
        tile = packed_ref.shape[0]
        packed = packed_ref[...]                              # (tile, R+4) f32
        tt = packed[:, 0:1].astype(jnp.int32)                 # task_type
        pr = packed[:, 1:2].astype(jnp.int32)                 # priority

        # Combined one-hot over [type | priority] (disjoint column ranges).
        col = lax.broadcasted_iota(jnp.int32, (tile, n_oh), 1)
        oh = jnp.logical_or(col == tt, col == pr + n_task_types)
        oh = oh.astype(w_oh_ref.dtype)                        # (tile, 30)

        # [resource_req | size | ones] -> folded weights + folded total bias.
        vals = packed[:, 2:].astype(w_val_ref.dtype)          # (tile, R+2)

        h = jnp.dot(oh, w_oh_ref[...], preferred_element_type=jnp.float32)
        h = h + jnp.dot(vals, w_val_ref[...], preferred_element_type=jnp.float32)
        h = jnp.maximum(h, 0.0)                               # ReLU; dropout = identity

        out = jnp.dot(h.astype(w2_ref.dtype), w2_ref[...],
                      preferred_element_type=jnp.float32)
        out_ref[...] = (out + b2_ref[...]).astype(out_ref.dtype)

    return kernel


def prepare_task_embedding_params(params, *, weights_dtype=jnp.float32):
    """One-time host-side folding of the four branches into the first fusion
    Linear.  Call this OUTSIDE the per-step path so the folding matmuls are
    not re-emitted on every forward call."""
    W1 = params["fusion_w1"]                    # (D, 4E)
    b1 = params["fusion_b1"]                    # (D,)
    D = W1.shape[0]
    E = params["type_table"].shape[1]
    W1t, W1r, W1p, W1s = (W1[:, 0:E], W1[:, E:2 * E],
                          W1[:, 2 * E:3 * E], W1[:, 3 * E:4 * E])

    t_fold = params["type_table"] @ W1t.T                      # (20, D)
    p_fold = params["prio_table"] @ W1p.T                      # (10, D)
    w_rf = params["res_w"].T @ W1r.T                           # (R, D)
    w_sf = params["size_w"].T @ W1s.T                          # (1, D)
    b_tot = (b1 + params["res_b"] @ W1r.T
             + params["size_b"] @ W1s.T).reshape(1, D)         # (1, D)

    w_oh = jnp.concatenate([t_fold, p_fold], axis=0)           # (30, D)
    w_val = jnp.concatenate([w_rf, w_sf, b_tot], axis=0)       # (R+2, D)
    w2 = params["fusion_w2"].T                                 # (D, D)
    b2 = params["fusion_b2"].reshape(1, D)                     # (1, D)

    return dict(w_oh=w_oh.astype(weights_dtype),
                w_val=w_val.astype(weights_dtype),
                w2=w2.astype(weights_dtype),
                b2=b2.astype(jnp.float32))


@partial(jax.jit, static_argnames=("row_tile",))
def task_embedding_forward(task_type, resource_req, priority, size, fused,
                           *, row_tile=None):
    B, S = task_type.shape
    R = resource_req.shape[-1]
    D = fused["w2"].shape[0]
    assert fused["w_oh"].shape[0] == N_TASK_TYPES + N_PRIORITIES
    PACK = R + 4                                    # [tt, pr, res..., size, 1]

    # Pack all per-token features into one lane-contiguous f32 input.
    tt = task_type.reshape(B, S, 1).astype(jnp.float32)
    pr = priority.reshape(B, S, 1).astype(jnp.float32)
    res = resource_req.astype(jnp.float32)
    sz = size.reshape(B, S, 1).astype(jnp.float32)
    ones = jnp.ones((B, S, 1), jnp.float32)
    packed = jnp.concatenate([tt, pr, res, sz, ones], axis=-1).reshape(B * S, PACK)

    N = B * S
    tile = row_tile if row_tile is not None else _choose_row_tile(N)
    n_steps = pl.cdiv(N, tile)
    n_pad = n_steps * tile
    if n_pad != N:                                  # pad the tail; sliced off below
        packed = jnp.pad(packed, ((0, n_pad - N), (0, 0)))

    kernel = make_kernel(N_TASK_TYPES, N_PRIORITIES)
    out = pl.pallas_call(
        kernel,
        out_shape=jax.ShapeDtypeStruct((n_pad, D), jnp.float32),
        grid=(n_steps,),
        in_specs=[
            pl.BlockSpec((tile, PACK), lambda i: (i, 0)),          # packed features
            pl.BlockSpec(fused["w_oh"].shape, lambda i: (0, 0)),   # folded [type|prio]
            pl.BlockSpec(fused["w_val"].shape, lambda i: (0, 0)),  # folded [res|size|bias]
            pl.BlockSpec(fused["w2"].shape, lambda i: (0, 0)),     # fusion W2^T
            pl.BlockSpec(fused["b2"].shape, lambda i: (0, 0)),     # fusion b2
        ],
        out_specs=pl.BlockSpec((tile, D), lambda i: (i, 0)),
        compiler_params=pltpu.CompilerParams(
            dimension_semantics=("parallel",),
            vmem_limit_bytes=32 * 1024 * 1024,
        ),
    )(packed, fused["w_oh"], fused["w_val"], fused["w2"], fused["b2"])

    return out[:N].reshape(B, S, D)


def reference(task_type, resource_req, priority, size, params):
    """Pure-JAX mirror of the PyTorch forward (eval mode; dropout identity)."""
    type_emb = jnp.take(params["type_table"], task_type.astype(jnp.int32), axis=0)
    res_emb = resource_req.astype(jnp.float32) @ params["res_w"].T + params["res_b"]
    prio_emb = jnp.take(params["prio_table"], priority.astype(jnp.int32), axis=0)
    size_emb = size.astype(jnp.float32) @ params["size_w"].T + params["size_b"]
    combined = jnp.concatenate([type_emb, res_emb, prio_emb, size_emb], axis=-1)
    h = combined @ params["fusion_w1"].T + params["fusion_b1"]
    h = jnp.maximum(h, 0.0)
    return h @ params["fusion_w2"].T + params["fusion_b2"]


def init_params(key, d_model, task_embedding_dim, resource_types):
    E = task_embedding_dim
    ks = jax.random.split(key, 6)

    def linear_init(k, out_f, in_f):
        bound = 1.0 / math.sqrt(in_f)
        kw, kb = jax.random.split(k)
        w = jax.random.uniform(kw, (out_f, in_f), minval=-bound, maxval=bound,
                               dtype=jnp.float32)
        b = jax.random.uniform(kb, (out_f,), minval=-bound, maxval=bound,
                               dtype=jnp.float32)
        return w, b

    type_table = jax.random.normal(ks[0], (N_TASK_TYPES, E), dtype=jnp.float32)
    prio_table = jax.random.normal(ks[1], (N_PRIORITIES, E), dtype=jnp.float32)
    res_w, res_b = linear_init(ks[2], E, resource_types)
    size_w, size_b = linear_init(ks[3], E, 1)
    w1, b1 = linear_init(ks[4], d_model, 4 * E)
    w2, b2 = linear_init(ks[5], d_model, d_model)
    return dict(type_table=type_table, prio_table=prio_table,
                res_w=res_w, res_b=res_b, size_w=size_w, size_b=size_b,
                fusion_w1=w1, fusion_b1=b1, fusion_w2=w2, fusion_b2=b2)


if __name__ == "__main__":
    B, S = 2, 16
    d_model = 256            # multiple of 128 -> lane-dense output stores
    task_embedding_dim = 64
    resource_types = 4

    key = jax.random.PRNGKey(0)
    k1, k2, k3, k4, kp = jax.random.split(key, 5)
    task_type = jax.random.randint(k1, (B, S), 0, N_TASK_TYPES)
    priority = jax.random.randint(k2, (B, S), 0, N_PRIORITIES)
    resource_req = jax.random.uniform(k3, (B, S, resource_types), dtype=jnp.float32)
    size = jax.random.uniform(k4, (B, S, 1), dtype=jnp.float32)
    params = init_params(kp, d_model, task_embedding_dim, resource_types)

    # One-time host-side folding (hoisted out of the per-call path).
    fused = prepare_task_embedding_params(params)

    out = task_embedding_forward(task_type, resource_req, priority, size, fused)
    out = jax.block_until_ready(out)
    ref = jax.block_until_ready(
        reference(task_type, resource_req, priority, size, params))
    assert out.shape == (B, S, d_model)
    np.testing.assert_allclose(np.asarray(out), np.asarray(ref),
                               rtol=1e-4, atol=1e-4)

    # Shape that does NOT divide the tile: exercises the row-padding path
    # (no silent tail truncation).
    B2, S2 = 3, 7
    kk = jax.random.split(key, 4)
    tt2 = jax.random.randint(kk[0], (B2, S2), 0, N_TASK_TYPES)
    pr2 = jax.random.randint(kk[1], (B2, S2), 0, N_PRIORITIES)
    rr2 = jax.random.uniform(kk[2], (B2, S2, resource_types), dtype=jnp.float32)
    sz2 = jax.random.uniform(kk[3], (B2, S2, 1), dtype=jnp.float32)
    out2 = jax.block_until_ready(
        task_embedding_forward(tt2, rr2, pr2, sz2, fused))
    ref2 = reference(tt2, rr2, pr2, sz2, params)
    np.testing.assert_allclose(np.asarray(out2), np.asarray(ref2),
                               rtol=1e-4, atol=1e-4)

    print("KERNEL_OK")
</pallas_src>

<mosaic_0001>
module attributes {stable_mosaic.version = 11 : i64} {
  func.func @kernel(%arg0: i32, %arg1: memref<16x8xf32, #tpu.memory_space<vmem>>, %arg2: memref<30x256xf32, #tpu.memory_space<vmem>>, %arg3: memref<6x256xf32, #tpu.memory_space<vmem>>, %arg4: memref<256x256xf32, #tpu.memory_space<vmem>>, %arg5: memref<1x256xf32, #tpu.memory_space<vmem>>, %arg6: memref<16x256xf32, #tpu.memory_space<vmem>>) attributes {dimension_semantics = [#tpu.dimension_semantics<parallel>], iteration_bounds = array<i64: 2>, scalar_prefetch = 0 : i64, scratch_operands = 0 : i64, tpu.core_type = #tpu.core_type<tc>, window_params = [{transform_indices = @transform_0, window_bounds = array<i64: 16, 8>}, {pipeline_mode = #tpu.pipeline_mode<synchronous>, transform_indices = @transform_1, window_bounds = array<i64: 30, 256>}, {pipeline_mode = #tpu.pipeline_mode<synchronous>, transform_indices = @transform_2, window_bounds = array<i64: 6, 256>}, {pipeline_mode = #tpu.pipeline_mode<synchronous>, transform_indices = @transform_3, window_bounds = array<i64: 256, 256>}, {pipeline_mode = #tpu.pipeline_mode<synchronous>, transform_indices = @transform_4, window_bounds = array<i64: 1, 256>}, {transform_indices = @transform_5, window_bounds = array<i64: 16, 256>}]} {
    %c0 = arith.constant 0 : index
    %c0_0 = arith.constant 0 : index
    %0 = vector.load %arg1[%c0, %c0_0] : memref<16x8xf32, #tpu.memory_space<vmem>>, vector<16x8xf32>
    %1 = vector.extract_strided_slice %0 {offsets = [0, 0], sizes = [16, 1], strides = [1, 1]} : vector<16x8xf32> to vector<16x1xf32>
    %2 = arith.fptosi %1 : vector<16x1xf32> to vector<16x1xi32>
    %3 = vector.extract_strided_slice %0 {offsets = [0, 1], sizes = [16, 1], strides = [1, 1]} : vector<16x8xf32> to vector<16x1xf32>
    %4 = arith.fptosi %3 : vector<16x1xf32> to vector<16x1xi32>
    %5 = tpu.iota {dimensions = array<i32: 1>} : vector<16x30xi32>
    %6 = vector.broadcast %2 : vector<16x1xi32> to vector<16x30xi32>
    %7 = arith.cmpi eq, %5, %6 : vector<16x30xi32>
    %c20_i32 = arith.constant 20 : i32
    %8 = vector.broadcast %c20_i32 : i32 to vector<16x1xi32>
    %9 = arith.addi %4, %8 : vector<16x1xi32>
    %10 = vector.broadcast %9 : vector<16x1xi32> to vector<16x30xi32>
    %11 = arith.cmpi eq, %5, %10 : vector<16x30xi32>
    %12 = arith.ori %7, %11 : vector<16x30xi1>
    %13 = arith.extui %12 : vector<16x30xi1> to vector<16x30xi32>
    %14 = arith.sitofp %13 : vector<16x30xi32> to vector<16x30xf32>
    %15 = vector.extract_strided_slice %0 {offsets = [0, 2], sizes = [16, 6], strides = [1, 1]} : vector<16x8xf32> to vector<16x6xf32>
    %c0_1 = arith.constant 0 : index
    %c0_2 = arith.constant 0 : index
    %16 = vector.load %arg2[%c0_1, %c0_2] : memref<30x256xf32, #tpu.memory_space<vmem>>, vector<30x256xf32>
    %cst = arith.constant dense<0.000000e+00> : vector<16x256xf32>
    %17 = tpu.matmul %14, %16, %cst {dimension_numbers = #tpu.dot_dimension_numbers<[1], [0], [0], [1], [0, 0, 1, 1], [], []>} : vector<16x30xf32>, vector<30x256xf32>, vector<16x256xf32> -> vector<16x256xf32>
    %c0_3 = arith.constant 0 : index
    %c0_4 = arith.constant 0 : index
    %18 = vector.load %arg3[%c0_3, %c0_4] : memref<6x256xf32, #tpu.memory_space<vmem>>, vector<6x256xf32>
    %cst_5 = arith.constant dense<0.000000e+00> : vector<16x256xf32>
    %19 = tpu.matmul %15, %18, %cst_5 {dimension_numbers = #tpu.dot_dimension_numbers<[1], [0], [0], [1], [0, 0, 1, 1], [], []>} : vector<16x6xf32>, vector<6x256xf32>, vector<16x256xf32> -> vector<16x256xf32>
    %20 = arith.addf %17, %19 : vector<16x256xf32>
    %cst_6 = arith.constant 0.000000e+00 : f32
    %21 = vector.broadcast %cst_6 : f32 to vector<16x256xf32>
    %22 = arith.maximumf %20, %21 : vector<16x256xf32>
    %c0_7 = arith.constant 0 : index
    %c0_8 = arith.constant 0 : index
    %23 = vector.load %arg4[%c0_7, %c0_8] : memref<256x256xf32, #tpu.memory_space<vmem>>, vector<256x256xf32>
    %cst_9 = arith.constant dense<0.000000e+00> : vector<16x256xf32>
    %24 = tpu.matmul %22, %23, %cst_9 {dimension_numbers = #tpu.dot_dimension_numbers<[1], [0], [0], [1], [0, 0, 1, 1], [], []>} : vector<16x256xf32>, vector<256x256xf32>, vector<16x256xf32> -> vector<16x256xf32>
    %c0_10 = arith.constant 0 : index
    %c0_11 = arith.constant 0 : index
    %25 = vector.load %arg5[%c0_10, %c0_11] : memref<1x256xf32, #tpu.memory_space<vmem>>, vector<1x256xf32>
    %26 = vector.broadcast %25 : vector<1x256xf32> to vector<16x256xf32>
    %27 = arith.addf %24, %26 : vector<16x256xf32>
    %c0_12 = arith.constant 0 : index
    %c0_13 = arith.constant 0 : index
    %28 = vector.load %arg6[%c0_12, %c0_13] : memref<16x256xf32, #tpu.memory_space<vmem>>, vector<16x256xf32>
    tpu.vector_store %arg6[%c0_12, %c0_13], %27 {strides = array<i32>} : memref<16x256xf32, #tpu.memory_space<vmem>>, vector<16x256xf32>,
    return
  }
  func.func @transform_0(%arg0: i32) -> (i32, i32) {
    %c0_i32 = arith.constant 0 : i32
    %c0_i32_0 = arith.constant 0 : i32
    return %arg0, %c0_i32 : i32, i32
  }
  func.func @transform_1(%arg0: i32) -> (i32, i32) {
    %c0_i32 = arith.constant 0 : i32
    %c0_i32_0 = arith.constant 0 : i32
    %c0_i32_1 = arith.constant 0 : i32
    return %c0_i32, %c0_i32_0 : i32, i32
  }
  func.func @transform_2(%arg0: i32) -> (i32, i32) {
    %c0_i32 = arith.constant 0 : i32
    %c0_i32_0 = arith.constant 0 : i32
    %c0_i32_1 = arith.constant 0 : i32
    return %c0_i32, %c0_i32_0 : i32, i32
  }
  func.func @transform_3(%arg0: i32) -> (i32, i32) {
    %c0_i32 = arith.constant 0 : i32
    %c0_i32_0 = arith.constant 0 : i32
    %c0_i32_1 = arith.constant 0 : i32
    return %c0_i32, %c0_i32_0 : i32, i32
  }
  func.func @transform_4(%arg0: i32) -> (i32, i32) {
    %c0_i32 = arith.constant 0 : i32
    %c0_i32_0 = arith.constant 0 : i32
    %c0_i32_1 = arith.constant 0 : i32
    return %c0_i32, %c0_i32_0 : i32, i32
  }
  func.func @transform_5(%arg0: i32) -> (i32, i32) {
    %c0_i32 = arith.constant 0 : i32
    %c0_i32_0 = arith.constant 0 : i32
    return %arg0, %c0_i32 : i32, i32
  }
}

</mosaic_0001>

<bundles_post_ra>
// kernel: task_embedding_forward.1
= control target key start
LH: loop header
LB: loop body
LE: loop exit
PB: predicated region body
PF: predicated region fallthrough
CT: control target
= control target key end

     0   :  { %10 = vsyncpa [#allocation3], 0  ;;  %s1206_s0 = inlined_call_operand.vmem [shape: f32[32,8], index: 0, kind: input, shape index: {}]   ;;  %s1207_s1 = inlined_call_operand.vmem [shape: f32[30,256], index: 1, kind: input, shape index: {}]   ;;  %s1208_s2 = inlined_call_operand.vmem [shape: f32[6,256], index: 2, kind: input, shape index: {}]   ;;  %s1209_s3 = inlined_call_operand.hbm [shape: f32[256,256], index: 3, kind: input, shape index: {}]   ;;  %s1210_s4 = inlined_call_operand.vmem [shape: f32[1,256], index: 4, kind: input, shape index: {}]   ;;  %s1211_s5 = inlined_call_operand.hbm [shape: f32[32,256], index: 5, kind: output, shape index: {}]  }
   0x1   :  { %11 = vsyncpa [#allocation4], 0 }
   0x2   :  { %13 = vsyncpa [#allocation4 + $0x1], 0  ;;  %s1025_s18 = smov 0   ;;  %s1027_s19 = smov 0  }
   0x3   :  { %s1029_s20 = smov 0   ;;  %s1031_s21 = smov 0  }
   0x4 LB: > { %s1046_s22 = sadd.s32 4294967295, %s982_s21   ;;  %s716_s23 = sadd.s32 4294967294, %s982_s21   ;;  %s982_s21 = sphi %s1031_s21, %s1227_s21   ;;  %s978_s20 = sphi %s1029_s20, %s1226_s20   ;;  %s974_s19 = sphi %s1027_s19, %s1225_s19   ;;  %s970_s18 = sphi %s1025_s18, %s1224_s18  }
   0x5   : > { %s1050_s24 = sadd.s32 1, %s982_s21   ;;  %s136_s25 = sadd.s32 1, %s978_s20 }
   0x6   : > { %s133_s26 = ssub.s32 %s982_s21, %s1050_s24  ;;  %p146_p0 = scmp.ne.s32.totalorder %s978_s20, %s974_s19 }
   0x7   : > { %p134_p1 = scmp.eq.s32.totalorder %s133_s26, 0  ;;  %p147_p2 = scmp.eq.s32.totalorder %s1046_s22, 1 }
   0x8   : > { %p152_p3 = scmp.ne.s32.totalorder %s974_s19, %s970_s18  ;;  %p153_p4 = scmp.eq.s32.totalorder %s716_s23, 1 }
   0x9   : > { %s1061_s27 = scalar_select %p134_p1, %s978_s20, %s136_s25  }
   0xa   : > { %p1063_p5 = por %p147_p2, %p146_p0  ;;  %p1067_p6 = por %p153_p4, %p152_p3 }
   0xb   : > { %p717_p7 = scmp.ge.s32.totalorder %s982_s21, 1  ;;  %p160_p8 = scmp.lt.s32.totalorder %s982_s21, 3 }
   0xc   : > { %s1215_s28 = scalar_select %p1063_p5, 1, 0 }
   0xd   : > { %s1216_s29 = scalar_select %p1067_p6, 1, 0 }
   0xe   : > { %p1212_p9 = scmp.eq.s32.totalorder %s1046_s22, 0  ;;  %p1074_p10 = pnand %p717_p7, %p160_p8 }
   0xf   : > { %s984_s6 = smov [#allocation2]   ;;  %s888_s11 = scalar_lea.hbm %s1209_s3, 8192 }
  0x10   : > { %s1217_s30 = scalar_select %p1074_p10, 1, 0 }
  0x11   : > { %s178_s7 = sshll.u32 %s984_s6, 4  ;;  %p831_p11 = pneg %p1074_p10  ;;  %s179_s7 = int_to_ptr.vmem [resolvable:$true] %s178_s7 }
  0x12   : > { %p889_p13 = scmp.ne.s32.totalorder %s1209_s3, %s888_s11  ;;  %p895_p3 = scmp.lt.u32.totalorder %s888_s11, %s1209_s3 }
  0x13   : > { %p1082_p12 = pnand %p1212_p9, %p831_p11 }
  0x15   : > { %p890_p0 = pneg %p1082_p12 }
  0x17   : > { %p891_p1 = pnand %p890_p0, %p889_p13 }
  0x19   : > { %p892_p2 = pneg %p891_p1 }
  0x1b   : > { %p897_p4 = pnand %p895_p3, %p892_p2 }
  0x1d   : > { %900 = shalt.err (!%p897_p4)
}
  0x1e   : > { %s901_s16 = scalar_lea.vmem %s179_s7, 8192  ;;  %p909_p9 = scmp.lt.s32.totalorder %s179_s7, %s179_s7 }
  0x1f   : > { %p902_p7 = scmp.ne.s32.totalorder %s179_s7, %s901_s16  ;;  %p910_p6 = scmp.lt.s32.totalorder %s901_s16, %s901_s16 }
  0x21   : > { %p904_p8 = pnand %p902_p7, %p890_p0  ;;  %p911_p5 = por %p910_p6, %p909_p9 }
  0x23   : > { %p905_p11 = pneg %p904_p8 }
  0x25   : > { %p912_p10 = pnand %p911_p5, %p905_p11 }
  0x27   : > { %915 = shalt.err (!%p912_p10)
}
  0x28   : > { %s985_s17 = smov 256   ;;  %s986_s23 = smov 16  }
  0x29   : > { %834 = dma.hbm_to_vmem [thread:$0]  (!%p1082_p12), %s1209_s3, 8192, %s179_s7, [#allocation3], %s985_s17, %s985_s17, %s986_s23  }
  0x2a   : > { %p1219_p13 = scmp.ne.s32.totalorder %s1217_s30, 0 }
  0x2b   : > { %p1220_p1 = scmp.eq.s32.totalorder (!%p1219_p13), %s1046_s22, 0 }
  0x2c   : > { %206 = sbr.rel (%p1219_p13) target bundleno = 654 (0x28e), region = 40 }
  0x33   : > { %961 = dma.done.wait (%p1220_p1), [#allocation3], 8192   ;;  %p1221_p0 = pmov %p1220_p1 }
  0x34   : > { %s723_s6 = sshll.u32 %s1046_s22, 1  ;;  %v987_v0 = vmov 0   ;;  %v988_v1 = vmov 0.0   ;;  %vm292_vm0 = vcmask 1045504   ;;  %v280_v4 = vld [vmem:[%s1208_s2 + $0x8] sm:$0x3f] }
  0x35   : > { %963 = vsyncadd (%p1221_p0), [#allocation3], 4294959104  ;;  %884 = vset.pattern.permute.xlu0 %v987_v0  ;;  %p235_p5 = scmp.lt.s32.totalorder %s723_s6, 3  ;;  %885 = vset.pattern.permute.xlu1 %v987_v0  ;;  %s989_s12 = smov 126   ;;  %v279_v7 = vld [vmem:[%s1208_s2] sm:$0x3f] }
  0x36   : > { %363 = vmatprep.mubr.f32.mxu0 %v988_v1  ;;  %727 = vmatprep.subr.msk.mxu0 %vm292_vm0, %v280_v4  ;;  %v272_v10 = vld [vmem:[%s1207_s1 + $0x8] sm:$0xff]  ;;  %v274_v11 = vld [vmem:[%s1207_s1 + $0x18] sm:$0xff]  ;;  %v990_v15 = vmov 1   ;;  %v470_v18 = vld [vmem:[#allocation2] sm:$0xff]  ;;  %vm287_vm1 = vcmask 48128   ;;  %vm991_vm2 = vmmov 1  }
  0x37   : > { %s1229_s6 = smov (!%p235_p5, %s723_s6), 3  ;;  %728 = vmatpush1.msk.msra.mxu0 %vm292_vm0, %v279_v7  ;;  %v743_v14 = vpack.c.bf16 %v274_v11, %v272_v10  ;;  %v471_v16 = vld [vmem:[#allocation2 + $0x8] sm:$0xff]  ;;  %v473_v17 = vld [vmem:[#allocation2 + $0x18] sm:$0xff]  ;;  %v472_v20 = vld [vmem:[#allocation2 + $0x10] sm:$0xff]  ;;  %vm376_vm9 = vcmask 244736   ;;  %s231_s15 = sand.u32 1, %s974_s19  }
  0x38   : > { %s724_s7 = sshll.u32 %s1229_s6, 3  ;;  %v753_v19 = vpack.c.bf16 %v473_v17, %v471_v16  ;;  %v475_v21 = vld [vmem:[#allocation2 + $0x28] sm:$0xff]  ;;  %v477_v22 = vld [vmem:[#allocation2 + $0x38] sm:$0xff]  ;;  %v755_v23 = vpack.c.bf16 %v472_v20, %v470_v18  ;;  %v474_v25 = vld [vmem:[#allocation2 + $0x20] sm:$0xff]  ;;  %s722_s23 = sshll.u32 %s231_s15, 5 }
  0x39   : > { %s238_s9 = scalar_lea.vmem %s1206_s0, %s724_s7  ;;  %744 = vmatprep.subr.bf16.mxu0 %v743_v14  ;;  %v757_v24 = vpack.c.bf16 %v477_v22, %v475_v21  ;;  %v476_v26 = vld [vmem:[#allocation2 + $0x30] sm:$0xff]  ;;  %v479_v27 = vld [vmem:[#allocation2 + $0x48] sm:$0xff]  ;;  %v481_v28 = vld [vmem:[#allocation2 + $0x58] sm:$0xff]  ;;  %s233_s25 = scalar_lea.vmem [#allocation5], %s722_s23 }
  0x3a   : > { %v241_v2 = vld [vmem:[%s238_s9] sm:$0xff]  ;;  %v242_v3 = vld [vmem:[%s238_s9 + $0x8] sm:$0xff]  ;;  %754 = vmatprep.subr.bf16.mxu1 %v753_v19  ;;  %v759_v29 = vpack.c.bf16 %v476_v26, %v474_v25  ;;  %v761_v30 = vpack.c.bf16 %v481_v28, %v479_v27  ;;  %v480_v32 = vld [vmem:[#allocation2 + $0x50] sm:$0xff]  ;;  %s642_s26 = sshll.u32 %s233_s25, 4  ;;  %s742_s6 = sshll.u32 %s1046_s22, 9  ;;  %s1158_s26 = int_to_ptr.vmem [resolvable:$true] %s642_s26 }
  0x3b   : > { %v823_v5 = vtrunc.f32 %v242_v3  ;;  %283 = vrot.lane.b32.xlu1 %v241_v2, %s989_s12  ;;  %v821_v6 = vtrunc.f32 %v241_v2  ;;  %756 = vmatpush1.bf16.msra.mxu1 %v755_v23  ;;  %v478_v31 = vld [vmem:[#allocation2 + $0x40] sm:$0xff]  ;;  %v483_v33 = vld [vmem:[#allocation2 + $0x68] sm:$0xff]  ;;  %v485_v34 = vld [vmem:[#allocation2 + $0x78] sm:$0xff]  ;;  %s1163_s8 = scalar_lea.hbm %s1211_s5, %s742_s6  ;;  %s1165_s9 = scalar_lea.sflag [#allocation4], %s231_s15 }
  0x3c   : > { %758 = vmatprep.subr.bf16.mxu1 %v757_v24  ;;  %v763_v35 = vpack.c.bf16 %v480_v32, %v478_v31  ;;  %v765_v36 = vpack.c.bf16 %v485_v34, %v483_v33  ;;  %v482_v37 = vld [vmem:[#allocation2 + $0x60] sm:$0xff]  ;;  %v484_v38 = vld [vmem:[#allocation2 + $0x70] sm:$0xff]  ;;  %v487_v39 = vld [vmem:[#allocation2 + $0x88] sm:$0xff]  ;;  %s916_s22 = scalar_lea.vmem %s1158_s26, 512  ;;  %p1222_p9 = scmp.ne.s32.totalorder %s1215_s28, 0 }
  0x3d   : > { %v822_v8 = vcvt.f32.s32 %v821_v6  ;;  %v824_v9 = vcvt.f32.s32 %v823_v5  ;;  %v489_v40 = vld [vmem:[#allocation2 + $0x98] sm:$0xff]  ;;  %v767_v41 = vpack.c.bf16 %v484_v38, %v482_v37  ;;  %v486_v43 = vld [vmem:[#allocation2 + $0x80] sm:$0xff]  ;;  %v488_v44 = vld [vmem:[#allocation2 + $0x90] sm:$0xff]  ;;  %p917_p6 = scmp.ne.s32.totalorder %s1158_s26, %s916_s22  ;;  %s992_s10 = smov [#allocation5]  }
  0x3e   : > { %v769_v42 = vpack.c.bf16 %v489_v40, %v487_v39  ;;  %v491_v45 = vld [vmem:[#allocation2 + $0xa8] sm:$0xff]  ;;  %v493_v46 = vld [vmem:[#allocation2 + $0xb8] sm:$0xff]  ;;  %v771_v47 = vpack.c.bf16 %v488_v44, %v486_v43  ;;  %v490_v49 = vld [vmem:[#allocation2 + $0xa0] sm:$0xff]  ;;  %s920_s11 = sshll.u32 %s992_s10, 4  ;;  %s921_s11 = int_to_ptr.vmem [resolvable:$false] %s920_s11 }
  0x3f   : > { %248 = vperm.xlu0 %884, %v822_v8   ;;  %251 = vperm.xlu1 %885, %v824_v9   ;;  %v255_v12 = vadd.s32 20, %v822_v8  ;;  %v256_v13 = vadd.s32 20, %v824_v9  ;;  %v773_v48 = vpack.c.bf16 %v493_v46, %v491_v45  ;;  %v492_v50 = vld [vmem:[#allocation2 + $0xb0] sm:$0xff]  ;;  %v495_v51 = vld [vmem:[#allocation2 + $0xc8] sm:$0xff]  ;;  %v497_v52 = vld [vmem:[#allocation2 + $0xd8] sm:$0xff]  ;;  %p918_p10 = pnand %p917_p6, %p1222_p9  ;;  %p923_p2 = scmp.lt.s32.totalorder %s1158_s26, %s921_s11 }
  0x40   : > { %760 = vmatpush1.bf16.msra.mxu1 %v759_v29  ;;  %v775_v53 = vpack.c.bf16 %v492_v50, %v490_v49  ;;  %v777_v54 = vpack.c.bf16 %v497_v52, %v495_v51  ;;  %v494_v55 = vld [vmem:[#allocation2 + $0xc0] sm:$0xff]  ;;  %v496_v56 = vld [vmem:[#allocation2 + $0xd0] sm:$0xff]  ;;  %v499_v57 = vld [vmem:[#allocation2 + $0xe8] sm:$0xff] }
  0x41   : > { %762 = vmatprep.subr.bf16.mxu1 %v761_v30  ;;  %v501_v58 = vld [vmem:[#allocation2 + $0xf8] sm:$0xff]  ;;  %v779_v59 = vpack.c.bf16 %v496_v56, %v494_v55  ;;  %v498_v61 = vld [vmem:[#allocation2 + $0xe0] sm:$0xff]  ;;  %v500_v62 = vld [vmem:[#allocation2 + $0xf0] sm:$0xff]  ;;  %p919_p12 = pneg %p918_p10 }
  0x42   : > { %v781_v60 = vpack.c.bf16 %v501_v58, %v499_v57  ;;  %v503_v63 = vld [vmem:[#allocation2 + $0x108] sm:$0xff]  ;;  %v505_v0 = vld [vmem:[#allocation2 + $0x118] sm:$0xff]  ;;  %v783_v2 = vpack.c.bf16 %v500_v62, %v498_v61  ;;  %v502_v4 = vld [vmem:[#allocation2 + $0x100] sm:$0xff] }
  0x43   : > { %886 = vset.pattern.permute.xlu0 %v990_v15  ;;  %887 = vset.pattern.permute.xlu1 %v990_v15  ;;  %v504_v5 = vld [vmem:[#allocation2 + $0x110] sm:$0xff]  ;;  %v507_v6 = vld [vmem:[#allocation2 + $0x128] sm:$0xff]  ;;  %v509_v7 = vld [vmem:[#allocation2 + $0x138] sm:$0xff] }
  0x44   : > { %258 = vperm.xlu0 %886, %v255_v12   ;;  %261 = vperm.xlu1 %887, %v256_v13   ;;  %v787_v8 = vpack.c.bf16 %v504_v5, %v502_v4  ;;  %v789_v9 = vpack.c.bf16 %v509_v7, %v507_v6  ;;  %v506_v10 = vld [vmem:[#allocation2 + $0x120] sm:$0xff]  ;;  %v508_v11 = vld [vmem:[#allocation2 + $0x130] sm:$0xff]  ;;  %v511_v12 = vld [vmem:[#allocation2 + $0x148] sm:$0xff] }
  0x45   : > { %764 = vmatpush1.bf16.msra.mxu1 %v763_v35  ;;  %v513_v13 = vld [vmem:[#allocation2 + $0x158] sm:$0xff]  ;;  %v791_v14 = vpack.c.bf16 %v508_v11, %v506_v10  ;;  %v510_v16 = vld [vmem:[#allocation2 + $0x140] sm:$0xff]  ;;  %v512_v17 = vld [vmem:[#allocation2 + $0x150] sm:$0xff] }
  0x46   : > { %766 = vmatprep.subr.bf16.mxu1 %v765_v36  ;;  %v793_v15 = vpack.c.bf16 %v513_v13, %v511_v12  ;;  %v515_v18 = vld [vmem:[#allocation2 + $0x168] sm:$0xff]  ;;  %v517_v19 = vld [vmem:[#allocation2 + $0x178] sm:$0xff]  ;;  %v795_v20 = vpack.c.bf16 %v512_v17, %v510_v16  ;;  %v514_v22 = vld [vmem:[#allocation2 + $0x160] sm:$0xff] }
  0x47   : > { %v797_v21 = vpack.c.bf16 %v517_v19, %v515_v18  ;;  %v516_v23 = vld [vmem:[#allocation2 + $0x170] sm:$0xff]  ;;  %v519_v24 = vld [vmem:[#allocation2 + $0x188] sm:$0xff]  ;;  %v521_v25 = vld [vmem:[#allocation2 + $0x198] sm:$0xff] }
  0x48   : > { %285 = vrot.lane.b32.xlu0 %v242_v3, %s989_s12  ;;  %v785_v3 = vpack.c.bf16 %v505_v0, %v503_v63  ;;  %v799_v26 = vpack.c.bf16 %v516_v23, %v514_v22  ;;  %v801_v27 = vpack.c.bf16 %v521_v25, %v519_v24  ;;  %v518_v28 = vld [vmem:[#allocation2 + $0x180] sm:$0xff]  ;;  %v520_v29 = vld [vmem:[#allocation2 + $0x190] sm:$0xff]  ;;  %v523_v30 = vld [vmem:[#allocation2 + $0x1a8] sm:$0xff]  ;;  %s922_s12 = scalar_lea.vmem %s921_s11, 1024 }
  0x49   : > { %768 = vmatpush1.bf16.msra.mxu1 %v767_v41  ;;  %v525_v31 = vld [vmem:[#allocation2 + $0x1b8] sm:$0xff]  ;;  %v803_v32 = vpack.c.bf16 %v520_v29, %v518_v28  ;;  %v522_v34 = vld [vmem:[#allocation2 + $0x1a0] sm:$0xff]  ;;  %v524_v35 = vld [vmem:[#allocation2 + $0x1b0] sm:$0xff]  ;;  %p924_p3 = scmp.lt.s32.totalorder %s922_s12, %s916_s22 }
  0x4a   : > { %770 = vmatprep.subr.bf16.mxu1 %v769_v42  ;;  %v805_v33 = vpack.c.bf16 %v525_v31, %v523_v30  ;;  %v527_v36 = vld [vmem:[#allocation2 + $0x1c8] sm:$0xff]  ;;  %v529_v37 = vld [vmem:[#allocation2 + $0x1d8] sm:$0xff]  ;;  %v807_v38 = vpack.c.bf16 %v524_v35, %v522_v34  ;;  %v526_v40 = vld [vmem:[#allocation2 + $0x1c0] sm:$0xff] }
  0x4b   : > { %v809_v39 = vpack.c.bf16 %v529_v37, %v527_v36  ;;  %v528_v41 = vld [vmem:[#allocation2 + $0x1d0] sm:$0xff]  ;;  %v271_v43 = vld [vmem:[%s1207_s1] sm:$0xff]  ;;  %v276_v45 = vld [vmem:[%s1207_s1 + $0x28] sm:$0xff]  ;;  %p925_p4 = por %p924_p3, %p923_p2 }
  0x4c   : > { %v811_v42 = vpack.c.bf16 %v528_v41, %v526_v40  ;;  %v273_v44 = vld [vmem:[%s1207_s1 + $0x10] sm:$0xff]  ;;  %v278_v46 = vld [vmem:[%s1207_s1 + $0x38] sm:$0x3f]  ;;  %v275_v49 = vld [vmem:[%s1207_s1 + $0x20] sm:$0xff] }
  0x4d   : > { %772 = vmatpush1.bf16.msra.mxu1 %v771_v47  ;;  %v745_v47 = vpack.c.bf16 %v273_v44, %v271_v43  ;;  %v277_v50 = vld [vmem:[%s1207_s1 + $0x30] sm:$0x3f]  ;;  %vm748_vm3 = vmpackc.low %vm292_vm0, %vm991_vm2  ;;  %v531_v62 = vld [vmem:[#allocation2 + $0x1e8] sm:$0xff]  ;;  %p926_p7 = pnand %p925_p4, %p919_p12 }
  0x4e   : > { %774 = vmatprep.subr.bf16.mxu1 %v773_v48  ;;  %v747_v48 = vpack.c.bf16 %v278_v46, %v276_v45  ;;  %v750_v52 = vpack.c.bf16 %v277_v50, %v275_v49  ;;  %v533_v63 = vld [vmem:[#allocation2 + $0x1f8] sm:$0xff] }
  0x4f   : > { %v813_v0 = vpack.c.bf16 %v533_v63, %v531_v62 }
  0x51   : > { %776 = vmatpush1.bf16.msra.mxu1 %v775_v53 }
  0x52   : > { %778 = vmatprep.subr.bf16.mxu1 %v777_v54  ;;  %v245_v54 = vlaneseq }
  0x54   : > { %v246_v56 = vand.u32 127, %v245_v54  ;;  %v537_v12 = vshrl.u32 %v245_v54, 7 }
  0x55   : > { %780 = vmatpush1.bf16.msra.mxu1 %v779_v59 }
  0x56   : > { %782 = vmatprep.subr.bf16.mxu1 %v781_v60  ;;  %v538_v13 = vsub.s32 0, %v537_v12 }
  0x59   : > { %784 = vmatpush1.bf16.msra.mxu1 %v783_v2  ;;  %v530_v2 = vld [vmem:[#allocation2 + $0x1e0] sm:$0xff] }
  0x5a   : > { %786 = vmatprep.subr.bf16.mxu1 %v785_v3  ;;  %v532_v3 = vld [vmem:[#allocation2 + $0x1f0] sm:$0xff] }
  0x5b   : > { %v815_v4 = vpack.c.bf16 %v532_v3, %v530_v2 }
  0x5d   : > { %788 = vmatpush1.bf16.msra.mxu1 %v787_v8 }
  0x5e   : > { %790 = vmatprep.subr.bf16.mxu1 %v789_v9 }
  0x61   : > { %792 = vmatpush1.bf16.msra.mxu1 %v791_v14  ;;  %v534_v14 = vld [vmem:[%s1210_s4] sm:$0x3] }
  0x62   : > { %794 = vmatprep.subr.bf16.mxu1 %v793_v15  ;;  %v542_v15 = vsub.s32 1, %v537_v12  ;;  %v539_v16 = vrot.slane %v534_v14, %v538_v13 }
  0x64   : > { %v543_v17 = vrot.slane %v534_v14, %v542_v15 }
  0x65   : > { %796 = vmatpush1.bf16.msra.mxu1 %v795_v20 }
  0x66   : > { %798 = vmatprep.subr.bf16.mxu1 %v797_v21 }
  0x69   : > { %800 = vmatpush1.bf16.msra.mxu1 %v799_v26 }
  0x6a   : > { %802 = vmatprep.subr.bf16.mxu1 %v801_v27 }
  0x6d   : > { %804 = vmatpush1.bf16.msra.mxu1 %v803_v32 }
  0x6e   : > { %806 = vmatprep.subr.bf16.mxu1 %v805_v33 }
  0x71   : > { %808 = vmatpush1.bf16.msra.mxu1 %v807_v38 }
  0x72   : > { %810 = vmatprep.subr.bf16.mxu1 %v809_v39 }
  0x75   : > { %812 = vmatpush1.bf16.msra.mxu1 %v811_v42 }
  0x76   : > { %814 = vmatprep.subr.bf16.mxu1 %v813_v0 }
  0x79   : > { %816 = vmatpush1.bf16.msra.mxu1 %v815_v4 }
  0xad   : > { %v284_v51 = vpop.permute.xlu1 %283 }
  0xae   : > { %729 = vmatmul.mubr.msk.f32.vlgmr.msra.gmra.mrb[0].mxu0 %vm287_vm1, %v284_v51 }
  0xaf   : > { %746 = vmatpush1.bf16.msra.mxu0 %v745_v47  ;;  %369 = vmatprep.mubr.f32.mxu0 %v988_v1 }
  0xb0   : > { %749 = vmatprep.subr.msk.bf16.mxu0 %vm748_vm3, %v747_v48 }
  0xb3   : > { %752 = vmatpush1.bf16.msk.msra.mxu0 %vm748_vm3, %v750_v52 }
  0xbe   : > { %v249_v53 = vpop.permute.xlu0 %248  ;;  %v252_v55 = vpop.permute.xlu1 %251 }
  0xbf   : > { %vm253_vm5 = vcmp.eq.s32.totalorder %v246_v56, %v249_v53  ;;  %vm254_vm7 = vcmp.eq.s32.totalorder %v246_v56, %v252_v55 }
  0xc3   : > { %v259_v57 = vpop.permute.xlu0 %258  ;;  %v262_v58 = vpop.permute.xlu1 %261 }
  0xc4   : > { %vm263_vm4 = vcmp.eq.s32.totalorder %v246_v56, %v259_v57  ;;  %vm264_vm8 = vcmp.eq.s32.totalorder %v246_v56, %v262_v58 }
  0xc5   : > { %vm265_vm6 = vmor %vm253_vm5, %vm263_vm4 }
  0xc6   : > { %v725_v60 = vsel %vm265_vm6, 1.0, %v988_v1  ;;  %vm266_vm10 = vmor %vm254_vm7, %vm264_vm8 }
  0xc7   : > { %v286_v59 = vpop.permute.xlu0 %285  ;;  %v726_v61 = vsel %vm266_vm10, 1.0, %v988_v1 }
  0xc8   : > { %730 = vmatmul.mubr.msk.f32.gmra.mrb[2].mxu0 %vm287_vm1, %v286_v59 }
  0xc9   : > { %453 = vmatprep.mubr.f32.mxu0 %v988_v1 }
  0xcc   : > { %733 = vmatmul.mubr.msk.f32.vlgmr.msra.gmra.mrb[0].mxu0 %vm376_vm9, %v725_v60 }
  0xcd   : > { %459 = vmatprep.mubr.f32.mxu0 %v988_v1 }
  0xd0   : > { %734 = vmatmul.mubr.msk.f32.gmra.mrb[2].mxu0 %vm376_vm9, %v726_v61 }
 0x19f   : > { %v455_v5 = vpop.f32.mrb[0].mxu0 }
 0x1a0   : > { %v457_v6 = vpop.f32.mrb[1].mxu0  ;;  %v466_v8 = vmax.f32 %v455_v5, 0.0 }
 0x1a1   : > { %v467_v7 = vmax.f32 %v457_v6, 0.0 }
 0x1a3   : > { %v461_v9 = vpop.f32.mrb[2].mxu0  ;;  %610 = vmatprep.mubr.f32.mxu1 %v467_v7 }
 0x1a4   : > { %v463_v10 = vpop.f32.mrb[3].mxu0  ;;  %611 = vmatmul.mubr.f32.vlgmr.msra.gmra.mrb[0].mxu1 %v466_v8  ;;  %v468_v1 = vmax.f32 %v461_v9, 0.0 }
 0x1a5   : > { %v469_v11 = vmax.f32 %v463_v10, 0.0 }
 0x1a7   : > { %616 = vmatprep.mubr.f32.mxu1 %v469_v11 }
 0x1a8   : > { %617 = vmatmul.mubr.f32.gmra.mrb[2].mxu1 %v468_v1 }
 0x277   : > { %v612_v18 = vpop.f32.mrb[0].mxu1 }
 0x278   : > { %v613_v19 = vadd.f32 %v612_v18, %v539_v16  ;;  %v614_v20 = vpop.f32.mrb[1].mxu1 }
 0x279   : > { %v615_v21 = vadd.f32 %v614_v20, %v543_v17 }
 0x27a   : > { %623 = vst [vmem:[%s233_s25] sm:$0xff] %v613_v19 }
 0x27b   : > { %624 = vst [vmem:[%s233_s25 + $0x8] sm:$0xff] %v615_v21  ;;  %v618_v22 = vpop.f32.mrb[2].mxu1 }
 0x27c   : > { %v619_v23 = vadd.f32 %v618_v22, %v539_v16  ;;  %v620_v24 = vpop.f32.mrb[3].mxu1 }
 0x27d   : > { %v621_v25 = vadd.f32 %v620_v24, %v543_v17 }
 0x27e   : > { %625 = vst [vmem:[%s233_s25 + $0x10] sm:$0xff] %v619_v23 }
 0x27f   : > { %626 = vst [vmem:[%s233_s25 + $0x18] sm:$0xff] %v621_v25 }
 0x280   : > { %929 = shalt.err (!%p926_p7)
}
 0x281   : > { %s930_s13 = scalar_lea.hbm %s1163_s8, 512  ;;  %s934_s16 = scalar_lea.hbm %s1211_s5, 1024 }
 0x282   : > { %p931_p8 = scmp.ne.s32.totalorder %s1163_s8, %s930_s13  ;;  %p935_p1 = scmp.lt.u32.totalorder %s1163_s8, %s1211_s5 }
 0x283   : > { %p936_p0 = scmp.lt.u32.totalorder %s934_s16, %s930_s13  ;;  %p938_p6 = scmp.lt.u32.totalorder %s930_s13, %s1163_s8 }
 0x284   : > { %p932_p11 = pnand %p931_p8, %p1222_p9 }
 0x285   : > { %p937_p5 = por %p936_p0, %p935_p1 }
 0x286   : > { %p933_p13 = pneg %p932_p11 }
 0x287   : > { %p939_p10 = por %p938_p6, %p937_p5 }
 0x289   : > { %p940_p12 = pnand %p939_p10, %p933_p13 }
 0x28b   : > { %943 = shalt.err (!%p940_p12)
}
 0x28c   : > { %s993_s25 = smov 256   ;;  %s994_s6 = smov 16  }
 0x28d   : > { %829 = dma.vmem_to_hbm [thread:$0]  (%p1222_p9), %s1158_s26, 512, %s1163_s8, %s1165_s9, %s993_s25, %s993_s25, %s994_s6  }
 0x28e PF: > { %p841_p2 = scmp.ge.s32.totalorder %s982_s21, 2  ;;  %s657_s7 = sand.u32 1, %s970_s18  }
 0x28f   : > { %p1223_p3 = scmp.ne.s32.totalorder %s1216_s29, 0  ;;  %s658_s30 = scalar_lea.sflag [#allocation4], %s657_s7 }
 0x291   : > { %p836_p4 = pnand %p841_p2, %p1223_p3 }
 0x293   : > { %965 = dma.done.wait (!%p836_p4), %s658_s30, 512  }
 0x294   : > { %967 = vsyncadd (!%p836_p4), %s658_s30, 4294966784  ;;  %p16_p7 = scmp.ge.s32.totalorder %s1050_s24, 4   ;;  %s1224_s18 = smov %s974_s19 }
 0x295   : > { %s1225_s19 = smov %s978_s20  ;;  %s1226_s20 = smov %s1061_s27 }
 0x296   : > { %s1227_s21 = smov %s1050_s24  ;;  %18 = sbr.rel (!%p16_p7) target bundleno = 4 (0x4), region = 80 }
 0x29d   :  { %663 = vsyncpa [#allocation3], 1 }
 0x29e   :  { %665 = vsyncpa [#allocation3 + $0x1], 1 }
 0x29f   :  { %666 = vsyncpa [#allocation4], 1 }
 0x2a0   :  { %668 = vsyncpa [#allocation4 + $0x1], 1 }

</bundles_post_ra>
